<compile_context>
chip_gen: v5e
topology: v5e:2x2
jax: 0.10.0
libtpu: 0.0.40
codegen_flags: <defaults>
</compile_context>

<pallas_src>
import functools

import jax
import jax.numpy as jnp
from jax.experimental import pallas as pl
from jax.experimental.pallas import tpu as pltpu

LANE = 128
HIDDEN = 100
SLOPE = 0.2      # nn.LeakyReLU(0.2) per the module spec
EPS = 1e-5       # BatchNorm1d default eps


def _round_up(n, m=LANE):
    return ((n + m - 1) // m) * m


def _bn_lrelu(h, gamma, beta):
    """Training-mode BatchNorm1d folded to h*scale + shift, then LeakyReLU(0.2).

    h: (B, F) f32; gamma/beta: (1, F) f32. Single-pass mean / E[x^2].
    Padded feature columns (gamma == 0, zero inputs) stay exactly zero.
    """
    m1 = jnp.mean(h, axis=0, keepdims=True)
    m2 = jnp.mean(h * h, axis=0, keepdims=True)
    var = jnp.maximum(m2 - m1 * m1, 0.0)                 # biased variance
    scale = gamma * jax.lax.rsqrt(var + EPS)             # (1, F)
    shift = beta - m1 * scale                            # (1, F)
    y = h * scale + shift
    return jnp.maximum(y, SLOPE * y)                     # LeakyReLU, 0<slope<1


def mlp_kernel(x_ref, w_ref, rows_ref, o_ref):
    x = x_ref[...]                                       # (B, P)  bf16
    rows = rows_ref[...]                                 # (8, P)  f32
    g1, be1 = rows[0:1, :], rows[1:2, :]
    g2, be2 = rows[2:3, :], rows[3:4, :]
    b3 = rows[4:5, :]

    # fc1 (bias cancelled by bn1) -> bn1 -> leaky_relu
    h = jnp.dot(x, w_ref[0], preferred_element_type=jnp.float32)
    h = _bn_lrelu(h, g1, be1)

    # fc2 (bias cancelled by bn2) -> bn2 -> leaky_relu
    h = jnp.dot(h.astype(jnp.bfloat16), w_ref[1],
                preferred_element_type=jnp.float32)
    h = _bn_lrelu(h, g2, be2)

    # fc3 (+ bias); padded logits kept lane-dense for an unmasked store.
    out = jnp.dot(h.astype(jnp.bfloat16), w_ref[2],
                  preferred_element_type=jnp.float32) + b3
    o_ref[...] = out


def data_classifier_digits(x, packed, n_class):
    """x: (B, input_size) float32. packed: slab-packed lane-padded params."""
    B, input_size = x.shape
    P = packed["w"].shape[1]                             # padded feature width
    c_pad = P

    # Zero-pad the input feature axis to the padded contraction width and cast
    # once here (extra columns meet zero w1 rows, so logits are unchanged).
    x_p = jnp.zeros((B, P), jnp.bfloat16).at[:, :input_size].set(
        x.astype(jnp.bfloat16))

    args = (x_p, packed["w"], packed["rows"])

    flops = 2 * B * 3 * P * P
    bytes_accessed = (sum(a.size * a.dtype.itemsize for a in args)
                      + B * c_pad * 4)

    # Explicit VMEM budget: operands + output + f32 activations, with headroom.
    vmem_bytes = bytes_accessed + 2 * B * P * 4
    vmem_limit = max(4 << 20, 4 * vmem_bytes)

    vmem_spec = pl.BlockSpec(memory_space=pltpu.MemorySpace.VMEM)

    out_padded = pl.pallas_call(
        mlp_kernel,
        out_shape=jax.ShapeDtypeStruct((B, c_pad), jnp.float32),
        in_specs=[vmem_spec] * len(args),
        out_specs=vmem_spec,
        compiler_params=pltpu.CompilerParams(vmem_limit_bytes=vmem_limit),
        cost_estimate=pl.CostEstimate(
            flops=flops,
            transcendentals=2 * P,                       # two rsqrt rows
            bytes_accessed=bytes_accessed),
    )(*args)
    return out_padded[:, :n_class]


def init_params(key, input_size, n_class):
    """Logical (PyTorch-shaped) params; weights cast to bf16 for DMA savings."""
    ks = jax.random.split(key, 6)

    def linear(kw, kb, fan_in, fan_out):
        # PyTorch Linear default: U(-1/sqrt(fan_in), 1/sqrt(fan_in))
        bound = 1.0 / (fan_in ** 0.5)
        w = jax.random.uniform(kw, (fan_in, fan_out), jnp.float32, -bound, bound)
        b = jax.random.uniform(kb, (1, fan_out), jnp.float32, -bound, bound)
        return w.astype(jnp.bfloat16), b

    w1, b1 = linear(ks[0], ks[1], input_size, HIDDEN)
    w2, b2 = linear(ks[2], ks[3], HIDDEN, HIDDEN)
    w3, b3 = linear(ks[4], ks[5], HIDDEN, n_class)

    return {
        "w1": w1, "b1": b1,
        "g1": jnp.ones((1, HIDDEN), jnp.float32),
        "be1": jnp.zeros((1, HIDDEN), jnp.float32),
        "w2": w2, "b2": b2,
        "g2": jnp.ones((1, HIDDEN), jnp.float32),
        "be2": jnp.zeros((1, HIDDEN), jnp.float32),
        "w3": w3, "b3": b3,
    }


def pack_params(p, input_size, n_class):
    """Pack all params into two slabs, zero-padded to P = max padded width.

      w    : (3, P, P) bf16  -- w1, w2, w3 (padded rows/cols are zero)
      rows : (8, P)    f32   -- [g1, be1, g2, be2, b3, 0, 0, 0]

    fc1/fc2 biases are intentionally dropped (cancelled by training-mode BN).
    Padded gamma lanes are 0, so padded hidden lanes are forced to exactly 0.
    Padded weight rows/cols are zero, so padding never changes the real logits.
    """
    P = max(_round_up(input_size), _round_up(HIDDEN), _round_up(n_class))

    def padw(w):
        return (jnp.zeros((P, P), jnp.bfloat16)
                .at[:w.shape[0], :w.shape[1]].set(w.astype(jnp.bfloat16)))

    def padrow(v):
        return jnp.zeros((1, P), jnp.float32).at[:, :v.shape[1]].set(v)

    w_slab = jnp.stack([padw(p["w1"]), padw(p["w2"]), padw(p["w3"])], axis=0)
    rows = jnp.concatenate(
        [padrow(p["g1"]), padrow(p["be1"]),
         padrow(p["g2"]), padrow(p["be2"]),
         padrow(p["b3"]),
         jnp.zeros((3, P), jnp.float32)], axis=0)        # (8, P)

    return {"w": w_slab, "rows": rows}


def reference_forward(x, p):
    """Pure-JAX reference mirroring the PyTorch module (training-mode BN),
    including the fc1/fc2 biases that the kernel drops (BN cancels them)."""
    def bn(h, g, b):
        m = h.mean(0, keepdims=True)
        v = ((h - m) ** 2).mean(0, keepdims=True)
        return (h - m) / jnp.sqrt(v + EPS) * g + b

    def lrelu(y):
        return jnp.where(y > 0, y, SLOPE * y)

    h = jnp.dot(x.astype(jnp.bfloat16), p["w1"],
                preferred_element_type=jnp.float32) + p["b1"]
    h = lrelu(bn(h, p["g1"], p["be1"]))
    h = jnp.dot(h.astype(jnp.bfloat16), p["w2"],
                preferred_element_type=jnp.float32) + p["b2"]
    h = lrelu(bn(h, p["g2"], p["be2"]))
    return jnp.dot(h.astype(jnp.bfloat16), p["w3"],
                   preferred_element_type=jnp.float32) + p["b3"]


if __name__ == "__main__":
    B, INPUT_SIZE, N_CLASS = 8, 128, 10

    key = jax.random.PRNGKey(0)
    kx, kp = jax.random.split(key)
    x = jax.random.normal(kx, (B, INPUT_SIZE), jnp.float32)

    params = init_params(kp, INPUT_SIZE, N_CLASS)
    packed = pack_params(params, INPUT_SIZE, N_CLASS)

    fwd = jax.jit(functools.partial(data_classifier_digits, n_class=N_CLASS))
    out = fwd(x, packed)
    jax.block_until_ready(out)

    ref = reference_forward(x, params)
    assert out.shape == (B, N_CLASS)
    # bf16 matmuls + folded BN (no fc1/fc2 biases) vs. the bias-carrying
    # reference: differences are rounding-level only.
    assert jnp.allclose(out, ref, atol=3e-2, rtol=1e-2), "mismatch vs reference"

    print("KERNEL_OK")
</pallas_src>

<mosaic_0001>
module attributes {stable_mosaic.version = 11 : i64} {
  func.func @mlp_kernel(%arg0: memref<8x128xbf16, #tpu.memory_space<vmem>>, %arg1: memref<3x128x128xbf16, #tpu.memory_space<vmem>>, %arg2: memref<8x128xf32, #tpu.memory_space<vmem>>, %arg3: memref<8x128xf32, #tpu.memory_space<vmem>>) attributes {dimension_semantics = [], scalar_prefetch = 0 : i64, scratch_operands = 0 : i64, tpu.core_type = #tpu.core_type<tc>} {
    %c0 = arith.constant 0 : index
    %c0_0 = arith.constant 0 : index
    %0 = vector.load %arg0[%c0, %c0_0] : memref<8x128xbf16, #tpu.memory_space<vmem>>, vector<8x128xbf16>
    %c0_1 = arith.constant 0 : index
    %c0_2 = arith.constant 0 : index
    %1 = vector.load %arg2[%c0_1, %c0_2] : memref<8x128xf32, #tpu.memory_space<vmem>>, vector<8x128xf32>
    %2 = vector.extract_strided_slice %1 {offsets = [0, 0], sizes = [1, 128], strides = [1, 1]} : vector<8x128xf32> to vector<1x128xf32>
    %3 = vector.extract_strided_slice %1 {offsets = [1, 0], sizes = [1, 128], strides = [1, 1]} : vector<8x128xf32> to vector<1x128xf32>
    %4 = vector.extract_strided_slice %1 {offsets = [2, 0], sizes = [1, 128], strides = [1, 1]} : vector<8x128xf32> to vector<1x128xf32>
    %5 = vector.extract_strided_slice %1 {offsets = [3, 0], sizes = [1, 128], strides = [1, 1]} : vector<8x128xf32> to vector<1x128xf32>
    %6 = vector.extract_strided_slice %1 {offsets = [4, 0], sizes = [1, 128], strides = [1, 1]} : vector<8x128xf32> to vector<1x128xf32>
    %c0_3 = arith.constant 0 : index
    %c0_4 = arith.constant 0 : index
    %c0_5 = arith.constant 0 : index
    %7 = vector.load %arg1[%c0_3, %c0_4, %c0_5] : memref<3x128x128xbf16, #tpu.memory_space<vmem>>, vector<1x128x128xbf16>
    %8 = vector.shape_cast %7 : vector<1x128x128xbf16> to vector<128x128xbf16>
    %cst = arith.constant dense<0.000000e+00> : vector<8x128xf32>
    %9 = tpu.matmul %0, %8, %cst {dimension_numbers = #tpu.dot_dimension_numbers<[1], [0], [0], [1], [0, 0, 1, 1], [], []>} : vector<8x128xbf16>, vector<128x128xbf16>, vector<8x128xf32> -> vector<8x128xf32>
    %cst_6 = arith.constant dense<0.000000e+00> : vector<128xf32>
    %10 = vector.multi_reduction <add>, %9, %cst_6 [0] : vector<8x128xf32> to vector<128xf32>
    %11 = vector.shape_cast %10 : vector<128xf32> to vector<1x128xf32>
    %cst_7 = arith.constant 8.000000e+00 : f32
    %12 = vector.broadcast %cst_7 : f32 to vector<1x128xf32>
    %13 = arith.divf %11, %12 : vector<1x128xf32>
    %14 = arith.mulf %9, %9 : vector<8x128xf32>
    %cst_8 = arith.constant dense<0.000000e+00> : vector<128xf32>
    %15 = vector.multi_reduction <add>, %14, %cst_8 [0] : vector<8x128xf32> to vector<128xf32>
    %16 = vector.shape_cast %15 : vector<128xf32> to vector<1x128xf32>
    %cst_9 = arith.constant 8.000000e+00 : f32
    %17 = vector.broadcast %cst_9 : f32 to vector<1x128xf32>
    %18 = arith.divf %16, %17 : vector<1x128xf32>
    %19 = arith.mulf %13, %13 : vector<1x128xf32>
    %20 = arith.subf %18, %19 : vector<1x128xf32>
    %cst_10 = arith.constant 0.000000e+00 : f32
    %21 = vector.broadcast %cst_10 : f32 to vector<1x128xf32>
    %22 = arith.maximumf %20, %21 : vector<1x128xf32>
    %cst_11 = arith.constant 9.99999974E-6 : f32
    %23 = vector.broadcast %cst_11 : f32 to vector<1x128xf32>
    %24 = arith.addf %22, %23 : vector<1x128xf32>
    %25 = math.rsqrt %24 : vector<1x128xf32>
    %26 = arith.mulf %2, %25 : vector<1x128xf32>
    %27 = arith.mulf %13, %26 : vector<1x128xf32>
    %28 = arith.subf %3, %27 : vector<1x128xf32>
    %29 = vector.broadcast %26 : vector<1x128xf32> to vector<8x128xf32>
    %30 = arith.mulf %9, %29 : vector<8x128xf32>
    %31 = vector.broadcast %28 : vector<1x128xf32> to vector<8x128xf32>
    %32 = arith.addf %30, %31 : vector<8x128xf32>
    %cst_12 = arith.constant 2.000000e-01 : f32
    %33 = vector.broadcast %cst_12 : f32 to vector<8x128xf32>
    %34 = arith.mulf %33, %32 : vector<8x128xf32>
    %35 = arith.maximumf %32, %34 : vector<8x128xf32>
    %36 = arith.truncf %35 : vector<8x128xf32> to vector<8x128xbf16>
    %c1 = arith.constant 1 : index
    %c0_13 = arith.constant 0 : index
    %c0_14 = arith.constant 0 : index
    %37 = vector.load %arg1[%c1, %c0_13, %c0_14] : memref<3x128x128xbf16, #tpu.memory_space<vmem>>, vector<1x128x128xbf16>
    %38 = vector.shape_cast %37 : vector<1x128x128xbf16> to vector<128x128xbf16>
    %cst_15 = arith.constant dense<0.000000e+00> : vector<8x128xf32>
    %39 = tpu.matmul %36, %38, %cst_15 {dimension_numbers = #tpu.dot_dimension_numbers<[1], [0], [0], [1], [0, 0, 1, 1], [], []>} : vector<8x128xbf16>, vector<128x128xbf16>, vector<8x128xf32> -> vector<8x128xf32>
    %cst_16 = arith.constant dense<0.000000e+00> : vector<128xf32>
    %40 = vector.multi_reduction <add>, %39, %cst_16 [0] : vector<8x128xf32> to vector<128xf32>
    %41 = vector.shape_cast %40 : vector<128xf32> to vector<1x128xf32>
    %cst_17 = arith.constant 8.000000e+00 : f32
    %42 = vector.broadcast %cst_17 : f32 to vector<1x128xf32>
    %43 = arith.divf %41, %42 : vector<1x128xf32>
    %44 = arith.mulf %39, %39 : vector<8x128xf32>
    %cst_18 = arith.constant dense<0.000000e+00> : vector<128xf32>
    %45 = vector.multi_reduction <add>, %44, %cst_18 [0] : vector<8x128xf32> to vector<128xf32>
    %46 = vector.shape_cast %45 : vector<128xf32> to vector<1x128xf32>
    %cst_19 = arith.constant 8.000000e+00 : f32
    %47 = vector.broadcast %cst_19 : f32 to vector<1x128xf32>
    %48 = arith.divf %46, %47 : vector<1x128xf32>
    %49 = arith.mulf %43, %43 : vector<1x128xf32>
    %50 = arith.subf %48, %49 : vector<1x128xf32>
    %cst_20 = arith.constant 0.000000e+00 : f32
    %51 = vector.broadcast %cst_20 : f32 to vector<1x128xf32>
    %52 = arith.maximumf %50, %51 : vector<1x128xf32>
    %cst_21 = arith.constant 9.99999974E-6 : f32
    %53 = vector.broadcast %cst_21 : f32 to vector<1x128xf32>
    %54 = arith.addf %52, %53 : vector<1x128xf32>
    %55 = math.rsqrt %54 : vector<1x128xf32>
    %56 = arith.mulf %4, %55 : vector<1x128xf32>
    %57 = arith.mulf %43, %56 : vector<1x128xf32>
    %58 = arith.subf %5, %57 : vector<1x128xf32>
    %59 = vector.broadcast %56 : vector<1x128xf32> to vector<8x128xf32>
    %60 = arith.mulf %39, %59 : vector<8x128xf32>
    %61 = vector.broadcast %58 : vector<1x128xf32> to vector<8x128xf32>
    %62 = arith.addf %60, %61 : vector<8x128xf32>
    %cst_22 = arith.constant 2.000000e-01 : f32
    %63 = vector.broadcast %cst_22 : f32 to vector<8x128xf32>
    %64 = arith.mulf %63, %62 : vector<8x128xf32>
    %65 = arith.maximumf %62, %64 : vector<8x128xf32>
    %66 = arith.truncf %65 : vector<8x128xf32> to vector<8x128xbf16>
    %c2 = arith.constant 2 : index
    %c0_23 = arith.constant 0 : index
    %c0_24 = arith.constant 0 : index
    %67 = vector.load %arg1[%c2, %c0_23, %c0_24] : memref<3x128x128xbf16, #tpu.memory_space<vmem>>, vector<1x128x128xbf16>
    %68 = vector.shape_cast %67 : vector<1x128x128xbf16> to vector<128x128xbf16>
    %cst_25 = arith.constant dense<0.000000e+00> : vector<8x128xf32>
    %69 = tpu.matmul %66, %68, %cst_25 {dimension_numbers = #tpu.dot_dimension_numbers<[1], [0], [0], [1], [0, 0, 1, 1], [], []>} : vector<8x128xbf16>, vector<128x128xbf16>, vector<8x128xf32> -> vector<8x128xf32>
    %70 = vector.broadcast %6 : vector<1x128xf32> to vector<8x128xf32>
    %71 = arith.addf %69, %70 : vector<8x128xf32>
    %c0_26 = arith.constant 0 : index
    %c0_27 = arith.constant 0 : index
    %72 = vector.load %arg3[%c0_26, %c0_27] : memref<8x128xf32, #tpu.memory_space<vmem>>, vector<8x128xf32>
    tpu.vector_store %arg3[%c0_26, %c0_27], %71 {strides = array<i32>} : memref<8x128xf32, #tpu.memory_space<vmem>>, vector<8x128xf32>,
    return
  }
}

</mosaic_0001>

<bundles_post_ra>
// kernel: data_classifier_digits.1
= control target key start
LH: loop header
LB: loop body
LE: loop exit
PB: predicated region body
PF: predicated region fallthrough
CT: control target
= control target key end

     0   :  { %8 = vsyncpa [#allocation3], 0  ;;  %s609_s0 = inlined_call_operand.vmem [shape: bf16[8,128], index: 0, kind: input, shape index: {}]   ;;  %s610_s1 = inlined_call_operand.hbm [shape: bf16[3,128,128], index: 1, kind: input, shape index: {}]   ;;  %s611_s2 = inlined_call_operand.vmem [shape: f32[8,128], index: 2, kind: input, shape index: {}]   ;;  %s612_s3 = inlined_call_operand.hbm [shape: f32[8,128], index: 3, kind: output, shape index: {}]  }
   0x1   :  { %9 = vsyncpa [#allocation4], 0  ;;  %s16_s14 = sshll.u32 %s610_s1, 4  ;;  %s559_s15 = smov [#allocation2]   ;;  %s17_s14 = int_to_ptr.hbm [resolvable:$true] %s16_s14 }
   0x2   :  { %s18_s16 = sshll.u32 %s559_s15, 4  ;;  %s560_s17 = smov 64   ;;  %s19_s16 = int_to_ptr.vmem [resolvable:$true] %s18_s16 }
   0x3   :  { %s561_s18 = smov 4  }
   0x4   :  { %24 = dma.hbm_to_vmem [thread:$0]  %s17_s14, 3072, %s19_s16, [#allocation3], %s560_s17, %s560_s17, %s561_s18  }
   0x5   :  { %555 = dma.done.wait [#allocation3], 3072  }
   0x6   :  { %556 = vsyncadd [#allocation3], 4294964224  ;;  %v479_v0 = vld [vmem:[#allocation2 + $0x38] sm:$0xff]  ;;  %v478_v1 = vld [vmem:[#allocation2 + $0x30] sm:$0xff]  ;;  %v562_v9 = vmov 8.0   ;;  %s366_s24 = sshll.u32 %s612_s3, 4  ;;  %s367_s24 = int_to_ptr.hbm [resolvable:$true] %s366_s24 }
   0x7   :  { %97 = vmatpush.bf16.msra.mxu0 %v479_v0  ;;  %v477_v2 = vld [vmem:[#allocation2 + $0x28] sm:$0xff]  ;;  %v476_v3 = vld [vmem:[#allocation2 + $0x20] sm:$0xff]  ;;  %v475_v4 = vld [vmem:[#allocation2 + $0x18] sm:$0xff]  ;;  %501 = vrcp.f32 %v562_v9 }
   0x8   :  { %v474_v5 = vld [vmem:[#allocation2 + $0x10] sm:$0xff]  ;;  %v473_v6 = vld [vmem:[#allocation2 + $0x8] sm:$0xff]  ;;  %v472_v7 = vld [vmem:[#allocation2] sm:$0xff] }
   0x9   :  { %v31_v8 = vld [vmem:[%s609_s0] sm:$0xf]  ;;  %v487_v12 = vld [vmem:[#allocation2 + $0x78] sm:$0xff]  ;;  %v486_v14 = vld [vmem:[#allocation2 + $0x70] sm:$0xff] }
   0xa   :  { %224 = vmatpush.bf16.msra.mxu1 %v487_v12  ;;  %v485_v19 = vld [vmem:[#allocation2 + $0x68] sm:$0xff]  ;;  %v484_v25 = vld [vmem:[#allocation2 + $0x60] sm:$0xff]  ;;  %v483_v32 = vld [vmem:[#allocation2 + $0x58] sm:$0xff] }
   0xb   :  { %98 = vmatpush.bf16.msra.mxu0 %v478_v1  ;;  %v482_v37 = vld [vmem:[#allocation2 + $0x50] sm:$0xff]  ;;  %v481_v40 = vld [vmem:[#allocation2 + $0x48] sm:$0xff]  ;;  %v480_v43 = vld [vmem:[#allocation2 + $0x40] sm:$0xff] }
   0xc   :  { %v597_v50 = vld [vmem:[%s611_s2] sm:$0xff]  ;;  %v495_v0 = vld [vmem:[#allocation2 + $0xb8] sm:$0xff]  ;;  %v494_v1 = vld [vmem:[#allocation2 + $0xb0] sm:$0xff]  ;;  %s563_s2 = smov [#allocation5]  }
   0xd   :  { %v502_v10 = vpop.eup %501  ;;  %345 = vmatpush.bf16.msra.mxu2 %v495_v0  ;;  %s364_s21 = sshll.u32 %s563_s2, 4  ;;  %s365_s21 = int_to_ptr.vmem [resolvable:$true] %s364_s21 }
   0xe   :  { %v117_v11 = vmul.f32 8.0, %v502_v10  ;;  %225 = vmatpush.bf16.msra.mxu1 %v486_v14  ;;  %vm121_vm0 = vweird.f32 %v502_v10 }
   0xf   :  { %99 = vmatpush.bf16.msra.mxu0 %v477_v2 }
  0x10   :  { %v118_v13 = vsub.f32 1.0, %v117_v11 }
  0x11   :  { %346 = vmatpush.bf16.msra.mxu2 %v494_v1 }
  0x12   :  { %v119_v18 = vmul.f32 %v502_v10, %v118_v13  ;;  %226 = vmatpush.bf16.msra.mxu1 %v485_v19 }
  0x13   :  { %100 = vmatpush.bf16.msra.mxu0 %v476_v3 }
  0x14   :  { %v120_v24 = vadd.f32 %v502_v10, %v119_v18 }
  0x16   :  { %227 = vmatpush.bf16.msra.mxu1 %v484_v25  ;;  %v590_v31 = vsel %vm121_vm0, %v502_v10, %v120_v24  ;;  %v492_v10 = vld [vmem:[#allocation2 + $0xa0] sm:$0xff]  ;;  %v489_v24 = vld [vmem:[#allocation2 + $0x88] sm:$0xff] }
  0x17   :  { %101 = vmatpush.bf16.msra.mxu0 %v475_v4 }
  0x1a   :  { %228 = vmatpush.bf16.msra.mxu1 %v483_v32 }
  0x1b   :  { %102 = vmatpush.bf16.msra.mxu0 %v474_v5  ;;  %v493_v5 = vld [vmem:[#allocation2 + $0xa8] sm:$0xff] }
  0x1c   :  { %347 = vmatpush.bf16.msra.mxu2 %v493_v5 }
  0x1e   :  { %229 = vmatpush.bf16.msra.mxu1 %v482_v37 }
  0x1f   :  { %103 = vmatpush.bf16.msra.mxu0 %v473_v6 }
  0x20   :  { %348 = vmatpush.bf16.msra.mxu2 %v492_v10 }
  0x22   :  { %230 = vmatpush.bf16.msra.mxu1 %v481_v40 }
  0x23   :  { %104 = vmatpush.bf16.msra.mxu0 %v472_v7 }
  0x26   :  { %105 = vmatmul.bf16.vlgmr.msra.gmra.mxu0 %v31_v8  ;;  %231 = vmatpush.bf16.msra.mxu1 %v480_v43 }
  0xa3   :  { %v106_v15 = vpop.f32.mrf.mxu0 }
  0xa4   :  { %v110_v16 = vrot.slane %v106_v15, 4  ;;  %v124_v17 = vmul.f32 %v106_v15, %v106_v15 }
  0xa6   :  { %v111_v20 = vadd.f32 %v110_v16, %v106_v15  ;;  %v125_v21 = vrot.slane %v124_v17, 4  ;;  %v491_v16 = vld [vmem:[#allocation2 + $0x98] sm:$0xff] }
  0xa7   :  { %349 = vmatpush.bf16.msra.mxu2 %v491_v16 }
  0xa8   :  { %v112_v22 = vrot.slane %v111_v20, 2  ;;  %v126_v23 = vadd.f32 %v125_v21, %v124_v17  ;;  %v490_v21 = vld [vmem:[#allocation2 + $0x90] sm:$0xff] }
  0xaa   :  { %v113_v26 = vadd.f32 %v112_v22, %v111_v20  ;;  %v127_v27 = vrot.slane %v126_v23, 2 }
  0xab   :  { %v108_v28 = vpop.f32.mrf.mxu0  ;;  %350 = vmatpush.bf16.msra.mxu2 %v490_v21 }
  0xac   :  { %v114_v29 = vrot.slane %v113_v26, 1  ;;  %v128_v30 = vadd.f32 %v127_v27, %v126_v23  ;;  %v488_v27 = vld [vmem:[#allocation2 + $0x80] sm:$0xff] }
  0xae   :  { %v115_v33 = vadd.f32 %v114_v29, %v113_v26  ;;  %v129_v34 = vrot.slane %v128_v30, 1 }
  0xaf   :  { %351 = vmatpush.bf16.msra.mxu2 %v489_v24 }
  0xb0   :  { %v123_v35 = vmul.f32 %v590_v31, %v115_v33  ;;  %v130_v36 = vadd.f32 %v129_v34, %v128_v30 }
  0xb2   :  { %v131_v38 = vmul.f32 %v130_v36, %v590_v31  ;;  %v132_v39 = vmul.f32 %v123_v35, %v123_v35 }
  0xb3   :  { %352 = vmatpush.bf16.msra.mxu2 %v488_v27 }
  0xb4   :  { %v133_v41 = vsub.f32 %v131_v38, %v132_v39 }
  0xb6   :  { %v134_v42 = vmax.f32 %v133_v41, 0.0 }
  0xb8   :  { %v135_v44 = vadd.f32 1e-05, %v134_v42 }
  0xba   :  { %503 = vrsqrt.f32 %v135_v44  ;;  %vm142_vm2 = vweird.f32 %v135_v44 }
  0xc0   :  { %v504_v45 = vpop.eup %503 }
  0xc1   :  { %v137_v46 = vmul.f32 %v504_v45, %v135_v44  ;;  %vm143_vm1 = vweird.f32 %v504_v45 }
  0xc2   :  { %vm144_vm3 = vmor %vm142_vm2, %vm143_vm1 }
  0xc3   :  { %v138_v47 = vmul.f32 %v504_v45, %v137_v46 }
  0xc5   :  { %v139_v48 = vmul.f32 0.5, %v138_v47  ;;  %v296_v47 = vperm.slane %v597_v50, 4 }
  0xc7   :  { %v140_v49 = vsub.f32 1.5, %v139_v48 }
  0xc9   :  { %v141_v51 = vmul.f32 %v504_v45, %v140_v49 }
  0xcb   :  { %v145_v52 = vsel %vm144_vm3, %v504_v45, %v141_v51 }
  0xcc   :  { %v146_v53 = vmul.f32 %v145_v52, %v597_v50 }
  0xce   :  { %v147_v54 = vmul.f32 %v146_v53, %v123_v35  ;;  %v152_v55 = vperm.slane %v146_v53, 0 }
  0xd0   :  { %v149_v56 = vrot.slane %v147_v54, 7  ;;  %v153_v58 = vmul.f32 %v152_v55, %v106_v15 }
  0xd2   :  { %v151_v57 = vsub.f32 %v597_v50, %v149_v56 }
  0xd4   :  { %v154_v59 = vperm.slane %v151_v57, 1 }
  0xd6   :  { %v155_v60 = vadd.f32 %v154_v59, %v153_v58 }
  0xd8   :  { %v156_v61 = vmul.f32 0.2, %v155_v60 }
  0xda   :  { %v157_v62 = vmax.f32 %v155_v60, %v156_v61 }
  0xdc   :  { %v158_v63 = vpack.c.bf16 %v157_v62, %v157_v62 }
  0xde   :  { %232 = vmatmul.bf16.vlgmr.msra.gmra.mxu1 %v158_v63 }
 0x15b   :  { %v233_v2 = vpop.f32.mrf.mxu1 }
 0x15c   :  { %v237_v3 = vrot.slane %v233_v2, 4  ;;  %v244_v4 = vmul.f32 %v233_v2, %v233_v2 }
 0x15e   :  { %v238_v6 = vadd.f32 %v237_v3, %v233_v2  ;;  %v245_v7 = vrot.slane %v244_v4, 4 }
 0x160   :  { %v239_v8 = vrot.slane %v238_v6, 2  ;;  %v246_v9 = vadd.f32 %v245_v7, %v244_v4 }
 0x162   :  { %v240_v11 = vadd.f32 %v239_v8, %v238_v6  ;;  %v247_v12 = vrot.slane %v246_v9, 2 }
 0x163   :  { %v235_v13 = vpop.f32.mrf.mxu1 }
 0x164   :  { %v241_v14 = vrot.slane %v240_v11, 1  ;;  %v248_v15 = vadd.f32 %v247_v12, %v246_v9 }
 0x166   :  { %v242_v17 = vadd.f32 %v241_v14, %v240_v11  ;;  %v249_v18 = vrot.slane %v248_v15, 1 }
 0x168   :  { %v243_v19 = vmul.f32 %v242_v17, %v590_v31  ;;  %v250_v20 = vadd.f32 %v249_v18, %v248_v15 }
 0x16a   :  { %v251_v22 = vmul.f32 %v250_v20, %v590_v31  ;;  %v252_v23 = vmul.f32 %v243_v19, %v243_v19 }
 0x16c   :  { %v253_v25 = vsub.f32 %v251_v22, %v252_v23 }
 0x16e   :  { %v254_v26 = vmax.f32 %v253_v25, 0.0 }
 0x170   :  { %v255_v28 = vadd.f32 1e-05, %v254_v26 }
 0x172   :  { %505 = vrsqrt.f32 %v255_v28  ;;  %vm262_vm5 = vweird.f32 %v255_v28 }
 0x178   :  { %v506_v29 = vpop.eup %505 }
 0x179   :  { %v257_v30 = vmul.f32 %v506_v29, %v255_v28  ;;  %vm263_vm4 = vweird.f32 %v506_v29 }
 0x17a   :  { %vm264_vm6 = vmor %vm262_vm5, %vm263_vm4 }
 0x17b   :  { %v258_v32 = vmul.f32 %v506_v29, %v257_v30 }
 0x17d   :  { %v259_v33 = vmul.f32 0.5, %v258_v32 }
 0x17f   :  { %v260_v34 = vsub.f32 1.5, %v259_v33 }
 0x181   :  { %v261_v35 = vmul.f32 %v506_v29, %v260_v34 }
 0x183   :  { %v265_v31 = vsel %vm264_vm6, %v506_v29, %v261_v35 }
 0x184   :  { %v266_v36 = vmul.f32 %v265_v31, %v597_v50 }
 0x186   :  { %v267_v37 = vmul.f32 %v266_v36, %v243_v19  ;;  %v272_v38 = vperm.slane %v266_v36, 2 }
 0x188   :  { %v269_v39 = vrot.slane %v267_v37, 7  ;;  %v273_v41 = vmul.f32 %v272_v38, %v233_v2 }
 0x18a   :  { %v271_v40 = vsub.f32 %v597_v50, %v269_v39 }
 0x18c   :  { %v274_v42 = vperm.slane %v271_v40, 3 }
 0x18e   :  { %v275_v43 = vadd.f32 %v274_v42, %v273_v41 }
 0x190   :  { %v276_v44 = vmul.f32 0.2, %v275_v43 }
 0x192   :  { %v277_v45 = vmax.f32 %v275_v43, %v276_v44 }
 0x194   :  { %v278_v46 = vpack.c.bf16 %v277_v45, %v277_v45 }
 0x196   :  { %353 = vmatmul.bf16.vlgmr.msra.gmra.mxu2 %v278_v46 }
 0x219   :  { %v354_v48 = vpop.f32.mrf.mxu2 }
 0x21a   :  { %v355_v49 = vadd.f32 %v354_v48, %v296_v47 }
 0x21c   :  { %358 = vst [vmem:[#allocation5] sm:$0xff] %v355_v49 }
 0x21d   :  { %369 = dma.vmem_to_hbm [thread:$0]  %s365_s21, 128, %s367_s24, [#allocation4]  }
 0x221   :  { %v356_v51 = vpop.f32.mrf.mxu2 }
 0x222   :  { %557 = dma.done.wait [#allocation4], 128  }
 0x223   :  { %558 = vsyncadd [#allocation4], 4294967168 }
 0x224   :  { %374 = vsyncpa [#allocation3], 1 }
 0x225   :  { %375 = vsyncpa [#allocation4], 1 }

</bundles_post_ra>
